<compile_context>
chip_gen: v5e
topology: v5e:2x2
jax: 0.10.0
libtpu: 0.0.40
codegen_flags: <defaults>
</compile_context>

<pallas_src>
import jax
import jax.numpy as jnp
from jax.experimental import pallas as pl
from jax.experimental.pallas import tpu as pltpu


def _leaky_relu(x, negative_slope=0.01):
    # matches torch.nn.LeakyReLU default negative_slope=0.01
    return jnp.where(x >= 0, x, negative_slope * x)


def _round_up(x, m):
    return (x + m - 1) // m * m


def _cdiv(a, b):
    return (a + b - 1) // b


def make_deep_mlp_kernel(n_layers):
    """Kernel body. refs = (x, w0, b0, w1, b1, ..., out)."""

    def kernel(*refs):
        x_ref = refs[0]
        o_ref = refs[-1]
        h = x_ref[...]                                   # bf16 (TB, in_p)
        for l in range(n_layers):
            w = refs[1 + 2 * l][...]                     # bf16 (in_p, out_p), VMEM-resident
            b = refs[2 + 2 * l][...]                     # f32  (1, out_p), broadcasts over batch
            acc = jnp.dot(h, w, preferred_element_type=jnp.float32) + b
            acc = _leaky_relu(acc)                       # f32 epilogue on the VPU
            # next matmul consumes bf16; keep last layer in f32 until the store.
            # NOTE: inter-layer bf16 round-trip compounds slightly with depth.
            h = acc.astype(jnp.bfloat16) if l + 1 < n_layers else acc
        # nn.Sequential(..., *layers, nn.LeakyReLU()) applies one extra LeakyReLU
        h = _leaky_relu(h)
        o_ref[...] = h.astype(o_ref.dtype)

    return kernel


def prepare_deep_params(weights, biases):
    """One-time (init-time) padding + bf16 cast of the MLP parameters.

    Hoisted out of deep_forward so the forward pass never re-materialises
    zero-padded copies of every weight tensor in HBM.
    """
    dims = [weights[0].shape[0]] + [w.shape[1] for w in weights]
    dims_p = [_round_up(d, 128) for d in dims]           # lane-dense feature dims

    w_ps, b_ps = [], []
    for l, (w, b) in enumerate(zip(weights, biases)):
        wi, wo = w.shape
        w_p = (
            jnp.zeros((dims_p[l], dims_p[l + 1]), jnp.bfloat16)
            .at[:wi, :wo]
            .set(w.astype(jnp.bfloat16))
        )
        b_p = (
            jnp.zeros((1, dims_p[l + 1]), jnp.float32)
            .at[:, :wo]
            .set(b.astype(jnp.float32))
        )
        w_ps.append(w_p)
        b_ps.append(b_p)

    return {
        "w_ps": tuple(w_ps),
        "b_ps": tuple(b_ps),
        "dims": tuple(dims),
        "dims_p": tuple(dims_p),
    }


def _choose_batch_tile(B, block_b):
    """Balanced batch tiling: TB multiple of 16, minimal padded-batch waste."""
    n_tiles = max(1, _cdiv(B, block_b))
    TB = _round_up(_cdiv(B, n_tiles), 16)
    Bp = n_tiles * TB
    return TB, Bp


def deep_forward(x_dense, x_sparse, embed_tables, prepared, *,
                 block_b=256, out_dtype=jnp.bfloat16):
    """Full Deep.forward: embeddings + concat in JAX, padded/tiled MLP in Pallas."""
    w_ps, b_ps = prepared["w_ps"], prepared["b_ps"]
    dims, dims_p = prepared["dims"], prepared["dims_p"]
    n_layers = len(w_ps)
    D0, out_dim = dims[0], dims[-1]
    in_p, out_p = dims_p[0], dims_p[-1]

    # --- embedding lookups + concat (glue): one bf16 concat, one pad ---
    # TODO(synk): fuse the embedding gathers + concat into the kernel via
    # PrefetchScalarGridSpec row-gather BlockSpecs to avoid the HBM round-trip.
    parts = [x_dense.astype(jnp.bfloat16)]
    for i, tab in enumerate(embed_tables):
        parts.append(tab[x_sparse[:, i]].astype(jnp.bfloat16))
    deep_input = jnp.concatenate(parts, axis=-1)          # bf16 (B, D0)
    B = deep_input.shape[0]
    assert deep_input.shape[1] == D0

    TB, Bp = _choose_batch_tile(B, block_b)
    # NOTE(v7x): with 2 TensorCores the "parallel" batch axis only helps when
    # Bp // TB >= 2; for B <= block_b a single tile is unavoidable.
    x_p = jnp.pad(deep_input, ((0, Bp - B), (0, in_p - D0)))   # single pad pass

    operands = [x_p]
    for l in range(n_layers):
        operands += [w_ps[l], b_ps[l]]

    flops = 2 * Bp * sum(dims_p[l] * dims_p[l + 1] for l in range(n_layers))
    out_itemsize = jnp.dtype(out_dtype).itemsize
    bytes_accessed = (
        x_p.size * 2                                       # bf16 activation read
        + sum(w.size * 2 for w in w_ps)                    # bf16 weights
        + sum(b.size * 4 for b in b_ps)                    # f32 biases
        + Bp * out_p * out_itemsize                        # output write
    )
    cost = pl.CostEstimate(flops=flops, transcendentals=0,
                           bytes_accessed=bytes_accessed)

    def build_call(single_buffer_weights):
        weight_kwargs = (
            dict(pipeline_mode=pl.Buffered(1)) if single_buffer_weights else {}
        )
        in_specs = [
            # streamed activation tile; raise to pl.Buffered(3) if the DMA is
            # exposed behind the short per-tile compute for deep narrow towers.
            pl.BlockSpec((TB, in_p), lambda i: (i, 0)),
        ]
        for l in range(n_layers):
            # same block index every grid step -> weights/biases stay resident.
            in_specs.append(
                pl.BlockSpec(w_ps[l].shape, lambda i: (0, 0), **weight_kwargs))
            in_specs.append(
                pl.BlockSpec(b_ps[l].shape, lambda i: (0, 0), **weight_kwargs))

        # VMEM budget from the real footprint (+ headroom), valid on v5e/v6e/v7x.
        wb = 1 if single_buffer_weights else 2
        weight_bytes = sum(w.size for w in w_ps) * 2 * wb
        bias_bytes = sum(b.size for b in b_ps) * 4 * wb
        act_in_bytes = 2 * TB * in_p * 2                   # double-buffered bf16 input
        act_out_bytes = 2 * TB * out_p * out_itemsize      # double-buffered output
        scratch_bytes = 3 * TB * max(dims_p) * 4           # unrolled f32 intermediates
        footprint = (weight_bytes + bias_bytes + act_in_bytes
                     + act_out_bytes + scratch_bytes)
        vmem_limit = int(max(32 << 20, min(64 << 20, 2 * footprint)))

        return pl.pallas_call(
            make_deep_mlp_kernel(n_layers),
            out_shape=jax.ShapeDtypeStruct((Bp, out_p), out_dtype),
            grid=(Bp // TB,),
            in_specs=in_specs,
            out_specs=pl.BlockSpec((TB, out_p), lambda i: (i, 0)),
            compiler_params=pltpu.CompilerParams(
                dimension_semantics=("parallel",),
                vmem_limit_bytes=vmem_limit,
            ),
            cost_estimate=cost,
        )

    use_single = hasattr(pl, "Buffered")
    try:
        out = build_call(use_single)(*operands)
    except Exception:
        # Fallback for JAX versions that reject pipeline_mode / Buffered(1).
        out = build_call(False)(*operands)

    # Strip batch/lane padding back to the logical shape.
    return out[:B, :out_dim]


def init_params(key, dense_fea_num, sparse_fea_list, embed_dim, hidden_layers):
    """Deterministic synthetic parameter init (shapes match the torch module)."""
    keys = jax.random.split(key, 2 * len(hidden_layers) + len(sparse_fea_list))
    ki = 0

    embed_tables = []
    for num_embeddings in sparse_fea_list:
        embed_tables.append(
            jax.random.normal(keys[ki], (num_embeddings, embed_dim), jnp.float32) * 0.1
        )
        ki += 1

    input_dim = dense_fea_num + len(sparse_fea_list) * embed_dim
    weights, biases = [], []
    in_dim = input_dim
    for out_dim in hidden_layers:
        weights.append(
            jax.random.normal(keys[ki], (in_dim, out_dim), jnp.float32)
            * (1.0 / jnp.sqrt(in_dim))
        )
        ki += 1
        biases.append(jax.random.normal(keys[ki], (out_dim,), jnp.float32) * 0.01)
        ki += 1
        in_dim = out_dim
    return embed_tables, weights, biases


def reference_forward(x_dense, x_sparse, embed_tables, weights, biases):
    """Pure-JAX f32 reference for correctness check."""
    sparse_embeds = [tab[x_sparse[:, i]] for i, tab in enumerate(embed_tables)]
    h = jnp.concatenate([x_dense] + sparse_embeds, axis=-1).astype(jnp.float32)
    for w, b in zip(weights, biases):
        h = _leaky_relu(h @ w + b)
    return _leaky_relu(h)


if __name__ == "__main__":
    # Small shapes consistent with the module's forward signature.
    batch = 8
    dense_fea_num = 8
    sparse_fea_list = [10, 20, 30, 40]   # cardinality of each sparse feature
    embed_dim = 8
    hidden_layers = [32, 16]

    key = jax.random.PRNGKey(0)
    k_params, k_dense, k_sparse = jax.random.split(key, 3)

    embed_tables, weights, biases = init_params(
        k_params, dense_fea_num, sparse_fea_list, embed_dim, hidden_layers
    )

    x_dense = jax.random.normal(k_dense, (batch, dense_fea_num), jnp.float32)
    x_sparse = jnp.stack(
        [
            jax.random.randint(jax.random.fold_in(k_sparse, i), (batch,), 0, n)
            for i, n in enumerate(sparse_fea_list)
        ],
        axis=1,
    ).astype(jnp.int32)

    # One-time parameter prep (padding + bf16 cast), reused across forwards.
    prepared = prepare_deep_params(weights, biases)

    out = deep_forward(x_dense, x_sparse, embed_tables, prepared)
    out = jax.block_until_ready(out)

    ref = reference_forward(x_dense, x_sparse, embed_tables, weights, biases)
    assert out.shape == (batch, hidden_layers[-1])
    # bf16 matmul inputs + bf16 output vs f32 reference -> bf16-level tolerance
    assert jnp.allclose(out.astype(jnp.float32), ref, atol=5e-2, rtol=5e-2), \
        "mismatch vs reference"

    print("KERNEL_OK")
</pallas_src>

<mosaic_0001>
module attributes {stable_mosaic.version = 11 : i64} {
  func.func @kernel(%arg0: i32, %arg1: memref<16x128xbf16, #tpu.memory_space<vmem>>, %arg2: memref<128x128xbf16, #tpu.memory_space<vmem>>, %arg3: memref<1x128xf32, #tpu.memory_space<vmem>>, %arg4: memref<128x128xbf16, #tpu.memory_space<vmem>>, %arg5: memref<1x128xf32, #tpu.memory_space<vmem>>, %arg6: memref<16x128xbf16, #tpu.memory_space<vmem>>) attributes {dimension_semantics = [#tpu.dimension_semantics<parallel>], iteration_bounds = array<i64: 1>, scalar_prefetch = 0 : i64, scratch_operands = 0 : i64, tpu.core_type = #tpu.core_type<tc>, window_params = [{transform_indices = @transform_0, window_bounds = array<i64: 16, 128>}, {pipeline_mode = #tpu.pipeline_mode<synchronous>, transform_indices = @transform_1, window_bounds = array<i64: 128, 128>}, {pipeline_mode = #tpu.pipeline_mode<synchronous>, transform_indices = @transform_2, window_bounds = array<i64: 1, 128>}, {pipeline_mode = #tpu.pipeline_mode<synchronous>, transform_indices = @transform_3, window_bounds = array<i64: 128, 128>}, {pipeline_mode = #tpu.pipeline_mode<synchronous>, transform_indices = @transform_4, window_bounds = array<i64: 1, 128>}, {transform_indices = @transform_5, window_bounds = array<i64: 16, 128>}]} {
    %c0 = arith.constant 0 : index
    %c0_0 = arith.constant 0 : index
    %0 = vector.load %arg1[%c0, %c0_0] : memref<16x128xbf16, #tpu.memory_space<vmem>>, vector<16x128xbf16>
    %c0_1 = arith.constant 0 : index
    %c0_2 = arith.constant 0 : index
    %1 = vector.load %arg2[%c0_1, %c0_2] : memref<128x128xbf16, #tpu.memory_space<vmem>>, vector<128x128xbf16>
    %c0_3 = arith.constant 0 : index
    %c0_4 = arith.constant 0 : index
    %2 = vector.load %arg3[%c0_3, %c0_4] : memref<1x128xf32, #tpu.memory_space<vmem>>, vector<1x128xf32>
    %cst = arith.constant dense<0.000000e+00> : vector<16x128xf32>
    %3 = tpu.matmul %0, %1, %cst {dimension_numbers = #tpu.dot_dimension_numbers<[1], [0], [0], [1], [0, 0, 1, 1], [], []>} : vector<16x128xbf16>, vector<128x128xbf16>, vector<16x128xf32> -> vector<16x128xf32>
    %4 = vector.broadcast %2 : vector<1x128xf32> to vector<16x128xf32>
    %5 = arith.addf %3, %4 : vector<16x128xf32>
    %cst_5 = arith.constant 0.000000e+00 : f32
    %6 = vector.broadcast %cst_5 : f32 to vector<16x128xf32>
    %7 = arith.cmpf oge, %5, %6 : vector<16x128xf32>
    %cst_6 = arith.constant 0.00999999977 : f32
    %8 = vector.broadcast %cst_6 : f32 to vector<16x128xf32>
    %9 = arith.mulf %8, %5 : vector<16x128xf32>
    %10 = arith.select %7, %5, %9 : vector<16x128xi1>, vector<16x128xf32>
    %11 = arith.truncf %10 : vector<16x128xf32> to vector<16x128xbf16>
    %c0_7 = arith.constant 0 : index
    %c0_8 = arith.constant 0 : index
    %12 = vector.load %arg4[%c0_7, %c0_8] : memref<128x128xbf16, #tpu.memory_space<vmem>>, vector<128x128xbf16>
    %c0_9 = arith.constant 0 : index
    %c0_10 = arith.constant 0 : index
    %13 = vector.load %arg5[%c0_9, %c0_10] : memref<1x128xf32, #tpu.memory_space<vmem>>, vector<1x128xf32>
    %cst_11 = arith.constant dense<0.000000e+00> : vector<16x128xf32>
    %14 = tpu.matmul %11, %12, %cst_11 {dimension_numbers = #tpu.dot_dimension_numbers<[1], [0], [0], [1], [0, 0, 1, 1], [], []>} : vector<16x128xbf16>, vector<128x128xbf16>, vector<16x128xf32> -> vector<16x128xf32>
    %15 = vector.broadcast %13 : vector<1x128xf32> to vector<16x128xf32>
    %16 = arith.addf %14, %15 : vector<16x128xf32>
    %cst_12 = arith.constant 0.000000e+00 : f32
    %17 = vector.broadcast %cst_12 : f32 to vector<16x128xf32>
    %18 = arith.cmpf oge, %16, %17 : vector<16x128xf32>
    %cst_13 = arith.constant 0.00999999977 : f32
    %19 = vector.broadcast %cst_13 : f32 to vector<16x128xf32>
    %20 = arith.mulf %19, %16 : vector<16x128xf32>
    %21 = arith.select %18, %16, %20 : vector<16x128xi1>, vector<16x128xf32>
    %cst_14 = arith.constant 0.000000e+00 : f32
    %22 = vector.broadcast %cst_14 : f32 to vector<16x128xf32>
    %23 = arith.cmpf oge, %21, %22 : vector<16x128xf32>
    %cst_15 = arith.constant 0.00999999977 : f32
    %24 = vector.broadcast %cst_15 : f32 to vector<16x128xf32>
    %25 = arith.mulf %24, %21 : vector<16x128xf32>
    %26 = arith.select %23, %21, %25 : vector<16x128xi1>, vector<16x128xf32>
    %27 = arith.truncf %26 : vector<16x128xf32> to vector<16x128xbf16>
    %c0_16 = arith.constant 0 : index
    %c0_17 = arith.constant 0 : index
    %28 = vector.load %arg6[%c0_16, %c0_17] : memref<16x128xbf16, #tpu.memory_space<vmem>>, vector<16x128xbf16>
    tpu.vector_store %arg6[%c0_16, %c0_17], %27 {strides = array<i32>} : memref<16x128xbf16, #tpu.memory_space<vmem>>, vector<16x128xbf16>,
    return
  }
  func.func @transform_0(%arg0: i32) -> (i32, i32) {
    %c0_i32 = arith.constant 0 : i32
    %c0_i32_0 = arith.constant 0 : i32
    return %arg0, %c0_i32 : i32, i32
  }
  func.func @transform_1(%arg0: i32) -> (i32, i32) {
    %c0_i32 = arith.constant 0 : i32
    %c0_i32_0 = arith.constant 0 : i32
    %c0_i32_1 = arith.constant 0 : i32
    return %c0_i32, %c0_i32_0 : i32, i32
  }
  func.func @transform_2(%arg0: i32) -> (i32, i32) {
    %c0_i32 = arith.constant 0 : i32
    %c0_i32_0 = arith.constant 0 : i32
    %c0_i32_1 = arith.constant 0 : i32
    return %c0_i32, %c0_i32_0 : i32, i32
  }
  func.func @transform_3(%arg0: i32) -> (i32, i32) {
    %c0_i32 = arith.constant 0 : i32
    %c0_i32_0 = arith.constant 0 : i32
    %c0_i32_1 = arith.constant 0 : i32
    return %c0_i32, %c0_i32_0 : i32, i32
  }
  func.func @transform_4(%arg0: i32) -> (i32, i32) {
    %c0_i32 = arith.constant 0 : i32
    %c0_i32_0 = arith.constant 0 : i32
    %c0_i32_1 = arith.constant 0 : i32
    return %c0_i32, %c0_i32_0 : i32, i32
  }
  func.func @transform_5(%arg0: i32) -> (i32, i32) {
    %c0_i32 = arith.constant 0 : i32
    %c0_i32_0 = arith.constant 0 : i32
    return %arg0, %c0_i32 : i32, i32
  }
}

module attributes {stable_mosaic.version = 11 : i64} {
  func.func @kernel(%arg0: i32, %arg1: memref<16x128xbf16, #tpu.memory_space<vmem>>, %arg2: memref<128x128xbf16, #tpu.memory_space<vmem>>, %arg3: memref<1x128xf32, #tpu.memory_space<vmem>>, %arg4: memref<128x128xbf16, #tpu.memory_space<vmem>>, %arg5: memref<1x128xf32, #tpu.memory_space<vmem>>, %arg6: memref<16x128xbf16, #tpu.memory_space<vmem>>) attributes {dimension_semantics = [#tpu.dimension_semantics<parallel>], iteration_bounds = array<i64: 1>, scalar_prefetch = 0 : i64, scratch_operands = 0 : i64, tpu.core_type = #tpu.core_type<tc>, window_params = [{transform_indices = @transform_0, window_bounds = array<i64: 16, 128>}, {pipeline_mode = #tpu.pipeline_mode<synchronous>, transform_indices = @transform_1, window_bounds = array<i64: 128, 128>}, {pipeline_mode = #tpu.pipeline_mode<synchronous>, transform_indices = @transform_2, window_bounds = array<i64: 1, 128>}, {pipeline_mode = #tpu.pipeline_mode<synchronous>, transform_indices = @transform_3, window_bounds = array<i64: 128, 128>}, {pipeline_mode = #tpu.pipeline_mode<synchronous>, transform_indices = @transform_4, window_bounds = array<i64: 1, 128>}, {transform_indices = @transform_5, window_bounds = array<i64: 16, 128>}]} {
    %c0 = arith.constant 0 : index
    %c0_0 = arith.constant 0 : index
    %0 = vector.load %arg1[%c0, %c0_0] : memref<16x128xbf16, #tpu.memory_space<vmem>>, vector<16x128xbf16>
    %c0_1 = arith.constant 0 : index
    %c0_2 = arith.constant 0 : index
    %1 = vector.load %arg2[%c0_1, %c0_2] : memref<128x128xbf16, #tpu.memory_space<vmem>>, vector<128x128xbf16>
    %c0_3 = arith.constant 0 : index
    %c0_4 = arith.constant 0 : index
    %2 = vector.load %arg3[%c0_3, %c0_4] : memref<1x128xf32, #tpu.memory_space<vmem>>, vector<1x128xf32>
    %cst = arith.constant dense<0.000000e+00> : vector<16x128xf32>
    %3 = tpu.matmul %0, %1, %cst {dimension_numbers = #tpu.dot_dimension_numbers<[1], [0], [0], [1], [0, 0, 1, 1], [], []>} : vector<16x128xbf16>, vector<128x128xbf16>, vector<16x128xf32> -> vector<16x128xf32>
    %4 = vector.broadcast %2 : vector<1x128xf32> to vector<16x128xf32>
    %5 = arith.addf %3, %4 : vector<16x128xf32>
    %cst_5 = arith.constant 0.000000e+00 : f32
    %6 = vector.broadcast %cst_5 : f32 to vector<16x128xf32>
    %7 = arith.cmpf oge, %5, %6 : vector<16x128xf32>
    %cst_6 = arith.constant 0.00999999977 : f32
    %8 = vector.broadcast %cst_6 : f32 to vector<16x128xf32>
    %9 = arith.mulf %8, %5 : vector<16x128xf32>
    %10 = arith.select %7, %5, %9 : vector<16x128xi1>, vector<16x128xf32>
    %11 = arith.truncf %10 : vector<16x128xf32> to vector<16x128xbf16>
    %c0_7 = arith.constant 0 : index
    %c0_8 = arith.constant 0 : index
    %12 = vector.load %arg4[%c0_7, %c0_8] : memref<128x128xbf16, #tpu.memory_space<vmem>>, vector<128x128xbf16>
    %c0_9 = arith.constant 0 : index
    %c0_10 = arith.constant 0 : index
    %13 = vector.load %arg5[%c0_9, %c0_10] : memref<1x128xf32, #tpu.memory_space<vmem>>, vector<1x128xf32>
    %cst_11 = arith.constant dense<0.000000e+00> : vector<16x128xf32>
    %14 = tpu.matmul %11, %12, %cst_11 {dimension_numbers = #tpu.dot_dimension_numbers<[1], [0], [0], [1], [0, 0, 1, 1], [], []>} : vector<16x128xbf16>, vector<128x128xbf16>, vector<16x128xf32> -> vector<16x128xf32>
    %15 = vector.broadcast %13 : vector<1x128xf32> to vector<16x128xf32>
    %16 = arith.addf %14, %15 : vector<16x128xf32>
    %cst_12 = arith.constant 0.000000e+00 : f32
    %17 = vector.broadcast %cst_12 : f32 to vector<16x128xf32>
    %18 = arith.cmpf oge, %16, %17 : vector<16x128xf32>
    %cst_13 = arith.constant 0.00999999977 : f32
    %19 = vector.broadcast %cst_13 : f32 to vector<16x128xf32>
    %20 = arith.mulf %19, %16 : vector<16x128xf32>
    %21 = arith.select %18, %16, %20 : vector<16x128xi1>, vector<16x128xf32>
    %cst_14 = arith.constant 0.000000e+00 : f32
    %22 = vector.broadcast %cst_14 : f32 to vector<16x128xf32>
    %23 = arith.cmpf oge, %21, %22 : vector<16x128xf32>
    %cst_15 = arith.constant 0.00999999977 : f32
    %24 = vector.broadcast %cst_15 : f32 to vector<16x128xf32>
    %25 = arith.mulf %24, %21 : vector<16x128xf32>
    %26 = arith.select %23, %21, %25 : vector<16x128xi1>, vector<16x128xf32>
    %27 = arith.truncf %26 : vector<16x128xf32> to vector<16x128xbf16>
    %c0_16 = arith.constant 0 : index
    %c0_17 = arith.constant 0 : index
    %28 = vector.load %arg6[%c0_16, %c0_17] : memref<16x128xbf16, #tpu.memory_space<vmem>>, vector<16x128xbf16>
    tpu.vector_store %arg6[%c0_16, %c0_17], %27 {strides = array<i32>} : memref<16x128xbf16, #tpu.memory_space<vmem>>, vector<16x128xbf16>,
    return
  }
  func.func @transform_0(%arg0: i32) -> (i32, i32) {
    %c0_i32 = arith.constant 0 : i32
    %c0_i32_0 = arith.constant 0 : i32
    return %arg0, %c0_i32 : i32, i32
  }
  func.func @transform_1(%arg0: i32) -> (i32, i32) {
    %c0_i32 = arith.constant 0 : i32
    %c0_i32_0 = arith.constant 0 : i32
    %c0_i32_1 = arith.constant 0 : i32
    return %c0_i32, %c0_i32_0 : i32, i32
  }
  func.func @transform_2(%arg0: i32) -> (i32, i32) {
    %c0_i32 = arith.constant 0 : i32
    %c0_i32_0 = arith.constant 0 : i32
    %c0_i32_1 = arith.constant 0 : i32
    return %c0_i32, %c0_i32_0 : i32, i32
  }
  func.func @transform_3(%arg0: i32) -> (i32, i32) {
    %c0_i32 = arith.constant 0 : i32
    %c0_i32_0 = arith.constant 0 : i32
    %c0_i32_1 = arith.constant 0 : i32
    return %c0_i32, %c0_i32_0 : i32, i32
  }
  func.func @transform_4(%arg0: i32) -> (i32, i32) {
    %c0_i32 = arith.constant 0 : i32
    %c0_i32_0 = arith.constant 0 : i32
    %c0_i32_1 = arith.constant 0 : i32
    return %c0_i32, %c0_i32_0 : i32, i32
  }
  func.func @transform_5(%arg0: i32) -> (i32, i32) {
    %c0_i32 = arith.constant 0 : i32
    %c0_i32_0 = arith.constant 0 : i32
    return %arg0, %c0_i32 : i32, i32
  }
}

</mosaic_0001>

<bundles_post_ra>
// kernel: tpu_custom_call.1
= control target key start
LH: loop header
LB: loop body
LE: loop exit
PB: predicated region body
PF: predicated region fallthrough
CT: control target
= control target key end

     0   :  { %10 = vsyncpa [#allocation3], 0  ;;  %s549_s0 = inlined_call_operand.hbm [shape: bf16[16,128], index: 0, kind: input, shape index: {}]   ;;  %s550_s1 = inlined_call_operand.hbm [shape: bf16[128,128], index: 1, kind: input, shape index: {}]   ;;  %s551_s2 = inlined_call_operand.vmem [shape: f32[1,128], index: 2, kind: input, shape index: {}]   ;;  %s552_s3 = inlined_call_operand.hbm [shape: bf16[128,128], index: 3, kind: input, shape index: {}]   ;;  %s553_s4 = inlined_call_operand.vmem [shape: f32[1,128], index: 4, kind: input, shape index: {}]   ;;  %s554_s5 = inlined_call_operand.hbm [shape: bf16[16,128], index: 5, kind: output, shape index: {}]  }
   0x1   :  { %11 = vsyncpa [#allocation6], 0 }
   0x2   :  { %12 = vsyncpa [#allocation4], 0  ;;  %s30_s20 = sshll.u32 %s550_s1, 4  ;;  %s483_s21 = smov [#allocation5]   ;;  %s31_s20 = int_to_ptr.hbm [resolvable:$true] %s30_s20 }
   0x3   :  { %s32_s22 = sshll.u32 %s483_s21, 4  ;;  %s17_s25 = sshll.u32 %s549_s0, 4  ;;  %s33_s22 = int_to_ptr.vmem [resolvable:$true] %s32_s22  ;;  %s18_s25 = int_to_ptr.hbm [resolvable:$true] %s17_s25 }
   0x4   :  { %s484_s26 = smov 64   ;;  %s485_s27 = smov 4  }
   0x5   :  { %38 = dma.hbm_to_vmem [thread:$0]  %s31_s20, 1024, %s33_s22, [#allocation6], %s484_s26, %s484_s26, %s485_s27  }
   0x6   :  { %s486_s28 = smov [#allocation2]   ;;  %s45_s1 = sshll.u32 %s552_s3, 4  ;;  %s46_s1 = int_to_ptr.hbm [resolvable:$true] %s45_s1 }
   0x7   :  { %s19_s29 = sshll.u32 %s486_s28, 4  ;;  %s487_s0 = smov [#allocation7]   ;;  %s20_s29 = int_to_ptr.vmem [resolvable:$true] %s19_s29 }
   0x8   :  { %25 = dma.hbm_to_vmem [thread:$0]  %s18_s25, 128, %s20_s29, [#allocation3], %s484_s26, %s484_s26, %s485_s27  }
   0x9   :  { %s47_s7 = sshll.u32 %s487_s0, 4  ;;  %s48_s7 = int_to_ptr.vmem [resolvable:$true] %s47_s7 }
   0xa   :  { %53 = dma.hbm_to_vmem [thread:$0]  %s46_s1, 1024, %s48_s7, [#allocation6], %s484_s26, %s484_s26, %s485_s27  }
   0xb   :  { %477 = dma.done.wait [#allocation3], 128  }
   0xc   :  { %478 = vsyncadd [#allocation3], 4294967168 }
   0xd   :  { %479 = dma.done.wait [#allocation6], 2048  }
   0xe   :  { %480 = vsyncadd [#allocation6], 4294965248  ;;  %v359_v0 = vld [vmem:[#allocation5 + $0x38] sm:$0xff]  ;;  %v358_v1 = vld [vmem:[#allocation5 + $0x30] sm:$0xff] }
   0xf   :  { %144 = vmatpush.bf16.msra.mxu0 %v359_v0  ;;  %v367_v2 = vld [vmem:[#allocation7 + $0x38] sm:$0xff]  ;;  %v366_v3 = vld [vmem:[#allocation7 + $0x30] sm:$0xff]  ;;  %v357_v4 = vld [vmem:[#allocation5 + $0x28] sm:$0xff] }
  0x10   :  { %233 = vmatpush.bf16.msra.mxu1 %v367_v2  ;;  %v365_v5 = vld [vmem:[#allocation7 + $0x28] sm:$0xff]  ;;  %v356_v6 = vld [vmem:[#allocation5 + $0x20] sm:$0xff]  ;;  %v355_v8 = vld [vmem:[#allocation5 + $0x18] sm:$0xff] }
  0x11   :  { %v364_v7 = vld [vmem:[#allocation7 + $0x20] sm:$0xff]  ;;  %v354_v9 = vld [vmem:[#allocation5 + $0x10] sm:$0xff]  ;;  %v353_v10 = vld [vmem:[#allocation5 + $0x8] sm:$0xff] }
  0x12   :  { %v352_v11 = vld [vmem:[#allocation5] sm:$0xff]  ;;  %v351_v12 = vld [vmem:[#allocation2] sm:$0xff]  ;;  %v362_v14 = vld [vmem:[#allocation7 + $0x10] sm:$0xff] }
  0x13   :  { %145 = vmatpush.bf16.msra.mxu0 %v358_v1  ;;  %v363_v13 = vld [vmem:[#allocation7 + $0x18] sm:$0xff]  ;;  %v361_v15 = vld [vmem:[#allocation7 + $0x8] sm:$0xff]  ;;  %v360_v16 = vld [vmem:[#allocation7] sm:$0xff] }
  0x14   :  { %234 = vmatpush.bf16.msra.mxu1 %v366_v3  ;;  %v379_v18 = vld [vmem:[%s551_s2] ss:$0 sm:$0xff]  ;;  %s488_s2 = smov [#allocation8]  }
  0x15   :  { %v380_v27 = vld [vmem:[%s553_s4] ss:$0 sm:$0xff]  ;;  %s267_s11 = sshll.u32 %s488_s2, 4  ;;  %s269_s4 = sshll.u32 %s554_s5, 4  ;;  %s268_s11 = int_to_ptr.vmem [resolvable:$true] %s267_s11  ;;  %s270_s4 = int_to_ptr.hbm [resolvable:$true] %s269_s4 }
  0x17   :  { %146 = vmatpush.bf16.msra.mxu0 %v357_v4 }
  0x18   :  { %235 = vmatpush.bf16.msra.mxu1 %v365_v5 }
  0x1b   :  { %147 = vmatpush.bf16.msra.mxu0 %v356_v6 }
  0x1c   :  { %236 = vmatpush.bf16.msra.mxu1 %v364_v7 }
  0x1f   :  { %148 = vmatpush.bf16.msra.mxu0 %v355_v8 }
  0x20   :  { %237 = vmatpush.bf16.msra.mxu1 %v363_v13 }
  0x23   :  { %149 = vmatpush.bf16.msra.mxu0 %v354_v9 }
  0x24   :  { %238 = vmatpush.bf16.msra.mxu1 %v362_v14 }
  0x27   :  { %150 = vmatpush.bf16.msra.mxu0 %v353_v10 }
  0x28   :  { %239 = vmatpush.bf16.msra.mxu1 %v361_v15 }
  0x2b   :  { %151 = vmatpush.bf16.msra.mxu0 %v352_v11 }
  0x2c   :  { %240 = vmatpush.bf16.msra.mxu1 %v360_v16 }
  0x2e   :  { %152 = vmatmul.bf16.vlgmr.msra.gmra.mxu0 %v351_v12 }
  0xab   :  { %v153_v17 = vpop.f32.mrf.mxu0 }
  0xac   :  { %v154_v19 = vadd.f32 %v379_v18, %v153_v17 }
  0xae   :  { %v160_v21 = vmul.f32 0.01, %v154_v19  ;;  %vm158_vm0 = vcmp.ge.f32.partialorder %v154_v19, 0.0 }
  0xb0   :  { %v162_v24 = vsel %vm158_vm0, %v154_v19, %v160_v21 }
  0xb3   :  { %v155_v20 = vpop.f32.mrf.mxu0 }
  0xb4   :  { %v156_v22 = vadd.f32 %v379_v18, %v155_v20 }
  0xb6   :  { %v161_v23 = vmul.f32 0.01, %v156_v22  ;;  %vm159_vm1 = vcmp.ge.f32.partialorder %v156_v22, 0.0 }
  0xb8   :  { %v163_v25 = vsel %vm159_vm1, %v156_v22, %v161_v23 }
  0xb9   :  { %v164_v26 = vpack.c.bf16 %v163_v25, %v162_v24 }
  0xbb   :  { %241 = vmatmul.bf16.vlgmr.msra.gmra.mxu1 %v164_v26 }
 0x138   :  { %v242_v28 = vpop.f32.mrf.mxu1 }
 0x139   :  { %v243_v29 = vadd.f32 %v380_v27, %v242_v28 }
 0x13b   :  { %v249_v30 = vmul.f32 0.01, %v243_v29  ;;  %vm247_vm2 = vcmp.ge.f32.partialorder %v243_v29, 0.0 }
 0x13d   :  { %v251_v32 = vsel %vm247_vm2, %v243_v29, %v249_v30 }
 0x13e   :  { %v255_v35 = vmul.f32 0.01, %v251_v32  ;;  %vm253_vm4 = vcmp.ge.f32.partialorder %v251_v32, 0.0 }
 0x140   :  { %v244_v31 = vpop.f32.mrf.mxu1  ;;  %v257_v38 = vsel %vm253_vm4, %v251_v32, %v255_v35 }
 0x141   :  { %v245_v33 = vadd.f32 %v380_v27, %v244_v31 }
 0x143   :  { %vm248_vm3 = vcmp.ge.f32.partialorder %v245_v33, 0.0  ;;  %v250_v34 = vmul.f32 0.01, %v245_v33 }
 0x145   :  { %v252_v36 = vsel %vm248_vm3, %v245_v33, %v250_v34 }
 0x146   :  { %vm254_vm5 = vcmp.ge.f32.partialorder %v252_v36, 0.0  ;;  %v256_v37 = vmul.f32 0.01, %v252_v36 }
 0x148   :  { %v258_v39 = vsel %vm254_vm5, %v252_v36, %v256_v37 }
 0x149   :  { %v371_v40 = vpack.c.bf16 %v258_v39, %v257_v38 }
 0x14b   :  { %372 = vst [vmem:[#allocation8] sm:$0xff] %v371_v40  }
 0x14c   :  { %275 = dma.vmem_to_hbm [thread:$0]  %s268_s11, 128, %s270_s4, [#allocation4], %s484_s26, %s484_s26, %s485_s27  }
 0x14d   :  { %481 = dma.done.wait [#allocation4], 128  }
 0x14e   :  { %482 = vsyncadd [#allocation4], 4294967168 }
 0x14f   :  { %280 = vsyncpa [#allocation3], 1 }
 0x150   :  { %281 = vsyncpa [#allocation6], 1 }
 0x151   :  { %282 = vsyncpa [#allocation4], 1 }

// kernel: tpu_custom_call.1
= control target key start
LH: loop header
LB: loop body
LE: loop exit
PB: predicated region body
PF: predicated region fallthrough
CT: control target
= control target key end

     0   :  { %10 = vsyncpa [#allocation3], 0  ;;  %s549_s0 = inlined_call_operand.hbm [shape: bf16[16,128], index: 0, kind: input, shape index: {}]   ;;  %s550_s1 = inlined_call_operand.hbm [shape: bf16[128,128], index: 1, kind: input, shape index: {}]   ;;  %s551_s2 = inlined_call_operand.vmem [shape: f32[1,128], index: 2, kind: input, shape index: {}]   ;;  %s552_s3 = inlined_call_operand.hbm [shape: bf16[128,128], index: 3, kind: input, shape index: {}]   ;;  %s553_s4 = inlined_call_operand.vmem [shape: f32[1,128], index: 4, kind: input, shape index: {}]   ;;  %s554_s5 = inlined_call_operand.hbm [shape: bf16[16,128], index: 5, kind: output, shape index: {}]  }
   0x1   :  { %11 = vsyncpa [#allocation6], 0 }
   0x2   :  { %12 = vsyncpa [#allocation4], 0  ;;  %s30_s20 = sshll.u32 %s550_s1, 4  ;;  %s483_s21 = smov [#allocation5]   ;;  %s31_s20 = int_to_ptr.hbm [resolvable:$true] %s30_s20 }
   0x3   :  { %s32_s22 = sshll.u32 %s483_s21, 4  ;;  %s17_s25 = sshll.u32 %s549_s0, 4  ;;  %s33_s22 = int_to_ptr.vmem [resolvable:$true] %s32_s22  ;;  %s18_s25 = int_to_ptr.hbm [resolvable:$true] %s17_s25 }
   0x4   :  { %s484_s26 = smov 64   ;;  %s485_s27 = smov 4  }
   0x5   :  { %38 = dma.hbm_to_vmem [thread:$0]  %s31_s20, 1024, %s33_s22, [#allocation6], %s484_s26, %s484_s26, %s485_s27  }
   0x6   :  { %s486_s28 = smov [#allocation2]   ;;  %s45_s1 = sshll.u32 %s552_s3, 4  ;;  %s46_s1 = int_to_ptr.hbm [resolvable:$true] %s45_s1 }
   0x7   :  { %s19_s29 = sshll.u32 %s486_s28, 4  ;;  %s487_s0 = smov [#allocation7]   ;;  %s20_s29 = int_to_ptr.vmem [resolvable:$true] %s19_s29 }
   0x8   :  { %25 = dma.hbm_to_vmem [thread:$0]  %s18_s25, 128, %s20_s29, [#allocation3], %s484_s26, %s484_s26, %s485_s27  }
   0x9   :  { %s47_s7 = sshll.u32 %s487_s0, 4  ;;  %s48_s7 = int_to_ptr.vmem [resolvable:$true] %s47_s7 }
   0xa   :  { %53 = dma.hbm_to_vmem [thread:$0]  %s46_s1, 1024, %s48_s7, [#allocation6], %s484_s26, %s484_s26, %s485_s27  }
   0xb   :  { %477 = dma.done.wait [#allocation3], 128  }
   0xc   :  { %478 = vsyncadd [#allocation3], 4294967168 }
   0xd   :  { %479 = dma.done.wait [#allocation6], 2048  }
   0xe   :  { %480 = vsyncadd [#allocation6], 4294965248  ;;  %v359_v0 = vld [vmem:[#allocation5 + $0x38] sm:$0xff]  ;;  %v358_v1 = vld [vmem:[#allocation5 + $0x30] sm:$0xff] }
   0xf   :  { %144 = vmatpush.bf16.msra.mxu0 %v359_v0  ;;  %v367_v2 = vld [vmem:[#allocation7 + $0x38] sm:$0xff]  ;;  %v366_v3 = vld [vmem:[#allocation7 + $0x30] sm:$0xff]  ;;  %v357_v4 = vld [vmem:[#allocation5 + $0x28] sm:$0xff] }
  0x10   :  { %233 = vmatpush.bf16.msra.mxu1 %v367_v2  ;;  %v365_v5 = vld [vmem:[#allocation7 + $0x28] sm:$0xff]  ;;  %v356_v6 = vld [vmem:[#allocation5 + $0x20] sm:$0xff]  ;;  %v355_v8 = vld [vmem:[#allocation5 + $0x18] sm:$0xff] }
  0x11   :  { %v364_v7 = vld [vmem:[#allocation7 + $0x20] sm:$0xff]  ;;  %v354_v9 = vld [vmem:[#allocation5 + $0x10] sm:$0xff]  ;;  %v353_v10 = vld [vmem:[#allocation5 + $0x8] sm:$0xff] }
  0x12   :  { %v352_v11 = vld [vmem:[#allocation5] sm:$0xff]  ;;  %v351_v12 = vld [vmem:[#allocation2] sm:$0xff]  ;;  %v362_v14 = vld [vmem:[#allocation7 + $0x10] sm:$0xff] }
  0x13   :  { %145 = vmatpush.bf16.msra.mxu0 %v358_v1  ;;  %v363_v13 = vld [vmem:[#allocation7 + $0x18] sm:$0xff]  ;;  %v361_v15 = vld [vmem:[#allocation7 + $0x8] sm:$0xff]  ;;  %v360_v16 = vld [vmem:[#allocation7] sm:$0xff] }
  0x14   :  { %234 = vmatpush.bf16.msra.mxu1 %v366_v3  ;;  %v379_v18 = vld [vmem:[%s551_s2] ss:$0 sm:$0xff]  ;;  %s488_s2 = smov [#allocation8]  }
  0x15   :  { %v380_v27 = vld [vmem:[%s553_s4] ss:$0 sm:$0xff]  ;;  %s267_s11 = sshll.u32 %s488_s2, 4  ;;  %s269_s4 = sshll.u32 %s554_s5, 4  ;;  %s268_s11 = int_to_ptr.vmem [resolvable:$true] %s267_s11  ;;  %s270_s4 = int_to_ptr.hbm [resolvable:$true] %s269_s4 }
  0x17   :  { %146 = vmatpush.bf16.msra.mxu0 %v357_v4 }
  0x18   :  { %235 = vmatpush.bf16.msra.mxu1 %v365_v5 }
  0x1b   :  { %147 = vmatpush.bf16.msra.mxu0 %v356_v6 }
  0x1c   :  { %236 = vmatpush.bf16.msra.mxu1 %v364_v7 }
  0x1f   :  { %148 = vmatpush.bf16.msra.mxu0 %v355_v8 }
  0x20   :  { %237 = vmatpush.bf16.msra.mxu1 %v363_v13 }
  0x23   :  { %149 = vmatpush.bf16.msra.mxu0 %v354_v9 }
  0x24   :  { %238 = vmatpush.bf16.msra.mxu1 %v362_v14 }
  0x27   :  { %150 = vmatpush.bf16.msra.mxu0 %v353_v10 }
  0x28   :  { %239 = vmatpush.bf16.msra.mxu1 %v361_v15 }
  0x2b   :  { %151 = vmatpush.bf16.msra.mxu0 %v352_v11 }
  0x2c   :  { %240 = vmatpush.bf16.msra.mxu1 %v360_v16 }
  0x2e   :  { %152 = vmatmul.bf16.vlgmr.msra.gmra.mxu0 %v351_v12 }
  0xab   :  { %v153_v17 = vpop.f32.mrf.mxu0 }
  0xac   :  { %v154_v19 = vadd.f32 %v379_v18, %v153_v17 }
  0xae   :  { %v160_v21 = vmul.f32 0.01, %v154_v19  ;;  %vm158_vm0 = vcmp.ge.f32.partialorder %v154_v19, 0.0 }
  0xb0   :  { %v162_v24 = vsel %vm158_vm0, %v154_v19, %v160_v21 }
  0xb3   :  { %v155_v20 = vpop.f32.mrf.mxu0 }
  0xb4   :  { %v156_v22 = vadd.f32 %v379_v18, %v155_v20 }
  0xb6   :  { %v161_v23 = vmul.f32 0.01, %v156_v22  ;;  %vm159_vm1 = vcmp.ge.f32.partialorder %v156_v22, 0.0 }
  0xb8   :  { %v163_v25 = vsel %vm159_vm1, %v156_v22, %v161_v23 }
  0xb9   :  { %v164_v26 = vpack.c.bf16 %v163_v25, %v162_v24 }
  0xbb   :  { %241 = vmatmul.bf16.vlgmr.msra.gmra.mxu1 %v164_v26 }
 0x138   :  { %v242_v28 = vpop.f32.mrf.mxu1 }
 0x139   :  { %v243_v29 = vadd.f32 %v380_v27, %v242_v28 }
 0x13b   :  { %v249_v30 = vmul.f32 0.01, %v243_v29  ;;  %vm247_vm2 = vcmp.ge.f32.partialorder %v243_v29, 0.0 }
 0x13d   :  { %v251_v32 = vsel %vm247_vm2, %v243_v29, %v249_v30 }
 0x13e   :  { %v255_v35 = vmul.f32 0.01, %v251_v32  ;;  %vm253_vm4 = vcmp.ge.f32.partialorder %v251_v32, 0.0 }
 0x140   :  { %v244_v31 = vpop.f32.mrf.mxu1  ;;  %v257_v38 = vsel %vm253_vm4, %v251_v32, %v255_v35 }
 0x141   :  { %v245_v33 = vadd.f32 %v380_v27, %v244_v31 }
 0x143   :  { %vm248_vm3 = vcmp.ge.f32.partialorder %v245_v33, 0.0  ;;  %v250_v34 = vmul.f32 0.01, %v245_v33 }
 0x145   :  { %v252_v36 = vsel %vm248_vm3, %v245_v33, %v250_v34 }
 0x146   :  { %vm254_vm5 = vcmp.ge.f32.partialorder %v252_v36, 0.0  ;;  %v256_v37 = vmul.f32 0.01, %v252_v36 }
 0x148   :  { %v258_v39 = vsel %vm254_vm5, %v252_v36, %v256_v37 }
 0x149   :  { %v371_v40 = vpack.c.bf16 %v258_v39, %v257_v38 }
 0x14b   :  { %372 = vst [vmem:[#allocation8] sm:$0xff] %v371_v40  }
 0x14c   :  { %275 = dma.vmem_to_hbm [thread:$0]  %s268_s11, 128, %s270_s4, [#allocation4], %s484_s26, %s484_s26, %s485_s27  }
 0x14d   :  { %481 = dma.done.wait [#allocation4], 128  }
 0x14e   :  { %482 = vsyncadd [#allocation4], 4294967168 }
 0x14f   :  { %280 = vsyncpa [#allocation3], 1 }
 0x150   :  { %281 = vsyncpa [#allocation6], 1 }
 0x151   :  { %282 = vsyncpa [#allocation4], 1 }

</bundles_post_ra>
